<compile_context>
chip_gen: v5e
topology: v5e:2x2
jax: 0.10.0
libtpu: 0.0.40
codegen_flags: <defaults>
</compile_context>

<pallas_src>
import functools

import jax
import jax.numpy as jnp
from jax.experimental import pallas as pl
from jax.experimental.pallas import tpu as pltpu

ALPHA = 0.25        # nn.PReLU() default init (single shared parameter per layer)
LANE = 128
SUB_BF16 = 16       # bf16 sublane tile -> pad Cin to a multiple of 16
MO_TARGET = 512     # target lane-tile width


def _round_up(a, m):
    return (a + m - 1) // m * m


def _cdiv(a, b):
    return -(-a // b)


def _pick_tile(m_need, halo):
    """Lane-tile width: multiple of the halo block, >= halo, aims for >=2 tiles."""
    two_way = _round_up(max(_cdiv(m_need, 2), LANE), LANE)
    tile = max(min(MO_TARGET, two_way), halo)
    return _round_up(tile, halo)


# ---------------------------------------------------------------------------
# Pallas kernel: tap-gather into VMEM scratch + ONE big-K GEMM + bias + PReLU.
# ---------------------------------------------------------------------------
def _gemm_kernel(*refs, deltas, mo_t, cin_pad, alpha, fuse_sub, gather):
    """refs: x_main (Cin_pad, MO_T) bf16, x_halo (Cin_pad, HALO) bf16,
             [sub_main, sub_halo]  (residual-fusion operand, same shapes),
             w (Cout_eff, T*T*Cin_pad) bf16, b (Cout_eff, 1) f32,
             o (Cout_eff, MO_T) bf16, [patch scratch (T*T*Cin_pad, MO_T) bf16]."""
    if fuse_sub:
        xm_ref, xh_ref, sm_ref, sh_ref, w_ref, b_ref, o_ref, *rest = refs
    else:
        xm_ref, xh_ref, w_ref, b_ref, o_ref, *rest = refs

    xm = xm_ref[...]
    xh = xh_ref[...]
    if fuse_sub:                                  # fused (l0 - x) / (h0 - x)
        xm = xm - sm_ref[...]
        xh = xh - sh_ref[...]

    if gather:
        patch_ref = rest[0]
        for t, d in enumerate(deltas):            # static unroll over the T*T taps
            lo = t * cin_pad
            take = mo_t - d
            if d == 0:
                patch_ref[lo:lo + cin_pad, :] = xm
            else:
                if take > 0:
                    patch_ref[lo:lo + cin_pad, 0:take] = xm[:, d:]
                patch_ref[lo:lo + cin_pad, take:mo_t] = xh[:, 0:d]
        patches = patch_ref[...]
    else:                                         # single-tap (1x1) fast path
        patches = xm

    acc = jnp.dot(w_ref[...], patches, preferred_element_type=jnp.float32)
    acc = acc + b_ref[...]                        # bias broadcast along lanes (f32)
    if alpha is not None:                         # PReLU, compile-time constant alpha
        acc = jnp.where(acc >= 0.0, acc, alpha * acc)
    o_ref[...] = acc.astype(o_ref.dtype)


def _run_gemm(x1, x2, wp, mo_t, halo, num_tiles, deltas, alpha):
    """x1/x2: (Cin_pad, num_tiles*MO_T + HALO) bf16 folded flat activations."""
    cin_pad = x1.shape[0]
    w_flat, bias = wp["w"], wp["b"]
    cout_eff, k_total = w_flat.shape
    gather = len(deltas) > 1
    fuse_sub = x2 is not None
    assert k_total == len(deltas) * cin_pad
    assert max(deltas) <= halo <= mo_t and mo_t % halo == 0
    if fuse_sub:
        assert x2.shape == x1.shape
    ratio = mo_t // halo

    kernel = functools.partial(
        _gemm_kernel, deltas=tuple(int(d) for d in deltas), mo_t=mo_t,
        cin_pad=cin_pad, alpha=alpha, fuse_sub=fuse_sub, gather=gather)

    x_main = pl.BlockSpec((cin_pad, mo_t), lambda i: (0, i))
    x_halo = pl.BlockSpec((cin_pad, halo), lambda i: (0, (i + 1) * ratio))
    in_specs = [x_main, x_halo]
    operands = [x1, x1]
    if fuse_sub:
        in_specs += [x_main, x_halo]
        operands += [x2, x2]
    in_specs += [pl.BlockSpec((cout_eff, k_total), lambda i: (0, 0)),   # weights
                 pl.BlockSpec((cout_eff, 1), lambda i: (0, 0))]         # bias
    operands += [w_flat, bias]
    scratch = [pltpu.VMEM((k_total, mo_t), jnp.bfloat16)] if gather else []

    return pl.pallas_call(
        kernel,
        out_shape=jax.ShapeDtypeStruct((cout_eff, num_tiles * mo_t), jnp.bfloat16),
        grid=(num_tiles,),
        in_specs=in_specs,
        out_specs=pl.BlockSpec((cout_eff, mo_t), lambda i: (0, i)),
        scratch_shapes=scratch,
        compiler_params=pltpu.CompilerParams(dimension_semantics=("parallel",)),
    )(*operands)


# ---------------------------------------------------------------------------
# Wrapper-side layout plumbing (pure data movement; all FLOPs are in the kernel).
# ---------------------------------------------------------------------------
def _fold_lanes(x, cin_pad, mo_t, halo):
    """(N, C, Hq, Wq) -> (Cin_pad, num_tiles*MO_T + HALO) bf16, batch folded on lanes."""
    n, c, hq, wq = x.shape
    mg = hq * wq
    m_need = n * mg
    num_tiles = _cdiv(m_need, mo_t)
    mx = num_tiles * mo_t + halo
    xf = x.reshape(n, c, mg).transpose(1, 0, 2).reshape(c, m_need)
    xf = jnp.pad(xf, ((0, cin_pad - c), (0, mx - m_need)))
    return xf.astype(jnp.bfloat16), num_tiles


def prep_conv_input(x, k, s, p, cin_pad):
    """Pad + space-to-depth + batch-fold for Conv2d(k, stride=s, padding=p)."""
    n, c, h, w = x.shape
    t = _cdiv(k, s)
    ho = (h + 2 * p - k) // s + 1
    wo = (w + 2 * p - k) // s + 1
    hs, ws = ho + t - 1, wo + t - 1                    # stride-1 tap grid
    hp, wp_ = hs * s, ws * s
    xp = jnp.pad(x, ((0, 0), (0, 0),
                     (p, max(0, hp - h - p)), (p, max(0, wp_ - w - p))))[:, :, :hp, :wp_]
    xs = xp.reshape(n, c, hs, s, ws, s).transpose(0, 1, 3, 5, 2, 4)
    xs = xs.reshape(n, c * s * s, hs, ws)
    delta_max = (t - 1) * ws + (t - 1)
    halo = _round_up(max(delta_max, 1), LANE)
    mo_t = _pick_tile(n * hs * ws, halo)
    xf, num_tiles = _fold_lanes(xs, cin_pad, mo_t, halo)
    deltas = tuple(u * ws + v for u in range(t) for v in range(t))
    meta = dict(n=n, ho=ho, wo=wo, hs=hs, ws=ws,
                halo=halo, mo_t=mo_t, num_tiles=num_tiles, deltas=deltas)
    return xf, meta


def prep_deconv_input(x, k, s, p, cin_pad):
    """Pad + batch-fold for ConvTranspose2d(k, s, p) via sub-pixel phase decomposition."""
    n, c, h, w = x.shape
    t = _cdiv(k, s)
    ho = (h - 1) * s - 2 * p + k
    wo = (w - 1) * s - 2 * p + k
    qlo = p // s
    qhi_h = (ho + p - 1) // s
    qhi_w = (wo + p - 1) // s
    qn_h, qn_w = qhi_h - qlo + 1, qhi_w - qlo + 1
    lpad = max(0, (t - 1) - qlo)
    rpad_h = max(0, qhi_h - (h - 1))
    rpad_w = max(0, qhi_w - (w - 1))
    hq, wq = h + lpad + rpad_h, w + lpad + rpad_w
    base = qlo - (t - 1) + lpad
    # Valid (kept) output rows/cols never tap past the per-image grid, so the batch
    # fold's cross-image tap reads only ever feed cropped garbage columns.
    assert base >= 0
    assert base + qn_h - 1 + (t - 1) <= hq - 1 and base + qn_w - 1 + (t - 1) <= wq - 1
    xp = jnp.pad(x, ((0, 0), (0, 0), (lpad, rpad_h), (lpad, rpad_w)))
    delta_max = (t - 1) * wq + (t - 1)
    halo = _round_up(max(delta_max, 1), LANE)
    mo_t = _pick_tile(n * hq * wq, halo)
    xf, num_tiles = _fold_lanes(xp, cin_pad, mo_t, halo)
    deltas = tuple(u * wq + v for u in range(t) for v in range(t))
    meta = dict(n=n, p=p, ho=ho, wo=wo, hq=hq, wq=wq, base=base, qn_h=qn_h, qn_w=qn_w,
                halo=halo, mo_t=mo_t, num_tiles=num_tiles, deltas=deltas)
    return xf, meta


def run_conv(xf, sub, wp, m, alpha):
    cout = wp["w"].shape[0]
    out = _run_gemm(xf, sub, wp, m["mo_t"], m["halo"], m["num_tiles"], m["deltas"], alpha)
    n, hs, ws = m["n"], m["hs"], m["ws"]
    out = out[:, :n * hs * ws].reshape(cout, n, hs, ws).transpose(1, 0, 2, 3)
    return out[:, :, :m["ho"], :m["wo"]]


def run_deconv(xf, sub, wp, m, alpha, s):
    cout_eff = wp["w"].shape[0]
    cout = cout_eff // (s * s)
    out = _run_gemm(xf, sub, wp, m["mo_t"], m["halo"], m["num_tiles"], m["deltas"], alpha)
    n, hq, wq = m["n"], m["hq"], m["wq"]
    qn_h, qn_w, b0 = m["qn_h"], m["qn_w"], m["base"]
    z = out[:, :n * hq * wq].reshape(cout_eff, n, hq, wq).transpose(1, 0, 2, 3)
    z = z[:, :, b0:b0 + qn_h, b0:b0 + qn_w]
    z = z.reshape(n, s, s, cout, qn_h, qn_w).transpose(0, 3, 4, 1, 5, 2)
    z = z.reshape(n, cout, qn_h * s, qn_w * s)
    off = m["p"] % s
    return z[:, :, off:off + m["ho"], off:off + m["wo"]]


def conv1x1(x, wp, alpha):
    cin_pad = wp["w"].shape[1]
    xf, m = prep_conv_input(x, 1, 1, 0, cin_pad)
    return run_conv(xf, None, wp, m, alpha)


# ---------------------------------------------------------------------------
# One-time weight packing (tap-major, channel-padded, bf16).
# ---------------------------------------------------------------------------
def _pack_conv(w, b, k, s):
    """torch Conv2d weight (Cout, Cin, k, k) -> flat (Cout, T*T*Cin_pad) bf16."""
    cout, cin = int(w.shape[0]), int(w.shape[1])
    t = _cdiv(k, s)
    cin_eff = cin * s * s
    cin_pad = _round_up(cin_eff, SUB_BF16)
    wp_ = jnp.pad(w, ((0, 0), (0, 0), (0, t * s - k), (0, t * s - k)))
    wm = wp_.reshape(cout, cin, t, s, t, s).transpose(2, 4, 0, 1, 3, 5)
    wm = wm.reshape(t * t, cout, cin_eff)
    wm = jnp.pad(wm, ((0, 0), (0, 0), (0, cin_pad - cin_eff)))
    w_flat = wm.transpose(1, 0, 2).reshape(cout, t * t * cin_pad).astype(jnp.bfloat16)
    bias = b.reshape(cout, 1).astype(jnp.float32)
    return {"w": w_flat, "b": bias}


def _pack_deconv(w, b, k, s):
    """torch ConvTranspose2d weight (Cin, Cout, k, k) -> flat (s*s*Cout, T*T*Cin_pad)."""
    cin, cout = int(w.shape[0]), int(w.shape[1])
    t = _cdiv(k, s)
    cin_pad = _round_up(cin, SUB_BF16)
    wp_ = jnp.pad(w, ((0, 0), (0, 0), (0, t * s - k), (0, t * s - k)))
    wr = wp_.reshape(cin, cout, t, s, t, s)[:, :, ::-1, :, ::-1, :]
    wm = wr.transpose(2, 4, 3, 5, 1, 0).reshape(t * t, s * s * cout, cin)
    wm = jnp.pad(wm, ((0, 0), (0, 0), (0, cin_pad - cin)))
    w_flat = wm.transpose(1, 0, 2).reshape(s * s * cout, t * t * cin_pad)
    bias = jnp.tile(b, s * s).reshape(s * s * cout, 1).astype(jnp.float32)
    return {"w": w_flat.astype(jnp.bfloat16), "b": bias}


# ---------------------------------------------------------------------------
# DBPN building blocks / model
# ---------------------------------------------------------------------------
def up_block(p, x, k, s, pad):
    t = _cdiv(k, s)
    cin_pad_d = p["c1"]["w"].shape[1] // (t * t)
    cin_pad_c = p["c2"]["w"].shape[1] // (t * t)
    xd, md = prep_deconv_input(x, k, s, pad, cin_pad_d)        # reused by c1 and c3
    h0 = run_deconv(xd, None, p["c1"], md, ALPHA, s)
    h0c, mc = prep_conv_input(h0, k, s, pad, cin_pad_c)
    l0 = run_conv(h0c, None, p["c2"], mc, ALPHA)
    l0d, md2 = prep_deconv_input(l0, k, s, pad, cin_pad_d)
    h1 = run_deconv(l0d, xd, p["c3"], md2, ALPHA, s)           # fused (l0 - x)
    return h1 + h0


def down_block(p, x, k, s, pad):
    t = _cdiv(k, s)
    cin_pad_c = p["c1"]["w"].shape[1] // (t * t)
    cin_pad_d = p["c2"]["w"].shape[1] // (t * t)
    xc, mc = prep_conv_input(x, k, s, pad, cin_pad_c)          # reused by c1 and c3
    l0 = run_conv(xc, None, p["c1"], mc, ALPHA)
    l0d, md = prep_deconv_input(l0, k, s, pad, cin_pad_d)
    h0 = run_deconv(l0d, None, p["c2"], md, ALPHA, s)
    h0c, mc2 = prep_conv_input(h0, k, s, pad, cin_pad_c)
    l1 = run_conv(h0c, xc, p["c3"], mc2, ALPHA)                # fused (h0 - x)
    return l1 + l0


def get_kernel_stride(scale):
    return {2: (6, 2), 4: (8, 4), 8: (12, 8)}[scale]


def _conv_params(key, cin, cout, k):
    kw, kb = jax.random.split(key)
    w = jax.random.normal(kw, (cout, cin, k, k), jnp.float32) / jnp.sqrt(cin * k * k)
    b = jax.random.normal(kb, (cout,), jnp.float32) * 0.01
    return w, b


def _deconv_params(key, cin, cout, k):
    kw, kb = jax.random.split(key)
    w = jax.random.normal(kw, (cin, cout, k, k), jnp.float32) / jnp.sqrt(cin * k * k)
    b = jax.random.normal(kb, (cout,), jnp.float32) * 0.01
    return w, b


def init_dbpns_params(key, scale, base_filter, feat, num_stages):
    kernel, _ = get_kernel_stride(scale)
    keys = iter(jax.random.split(key, 4 + 6 * num_stages))
    p = {"feat1": _conv_params(next(keys), base_filter, feat, 1)}
    for i in range(num_stages):
        p[f"up{i}"] = {
            "c1": _deconv_params(next(keys), feat, feat, kernel),
            "c2": _conv_params(next(keys), feat, feat, kernel),
            "c3": _deconv_params(next(keys), feat, feat, kernel),
        }
        if i < num_stages - 1:
            p[f"down{i}"] = {
                "c1": _conv_params(next(keys), feat, feat, kernel),
                "c2": _deconv_params(next(keys), feat, feat, kernel),
                "c3": _conv_params(next(keys), feat, feat, kernel),
            }
    p["output_conv"] = _conv_params(next(keys), feat * num_stages, feat, 1)
    return p


def prepare_dbpns_params(params, scale, num_stages):
    """One-time packing of all weights into the kernel's tap-major bf16 layout."""
    k, s = get_kernel_stride(scale)
    prep = {"feat1": _pack_conv(*params["feat1"], 1, 1),
            "output_conv": _pack_conv(*params["output_conv"], 1, 1)}
    for i in range(num_stages):
        u = params[f"up{i}"]
        prep[f"up{i}"] = {"c1": _pack_deconv(*u["c1"], k, s),
                          "c2": _pack_conv(*u["c2"], k, s),
                          "c3": _pack_deconv(*u["c3"], k, s)}
        if i < num_stages - 1:
            d = params[f"down{i}"]
            prep[f"down{i}"] = {"c1": _pack_conv(*d["c1"], k, s),
                                "c2": _pack_deconv(*d["c2"], k, s),
                                "c3": _pack_conv(*d["c3"], k, s)}
    return prep


def dbpns_forward(prepared, x_nchw, scale, num_stages):
    kernel, stride = get_kernel_stride(scale)
    pad = (kernel - stride) // 2                       # == 2 for scales {2,4,8}
    x = conv1x1(x_nchw, prepared["feat1"], ALPHA)
    h1 = [up_block(prepared["up0"], x, kernel, stride, pad)]
    # NOTE: the PyTorch forward loops range(num_stages) but __init__ only builds
    # down{0..num_stages-2} / up{0..num_stages-1}; the only runnable semantics are
    # num_stages-1 back-projection steps.
    for i in range(num_stages - 1):
        d = down_block(prepared[f"down{i}"], h1[-1], kernel, stride, pad)
        h1.append(up_block(prepared[f"up{i + 1}"], d, kernel, stride, pad))
    cat = jnp.concatenate(h1, axis=1)
    out = conv1x1(cat, prepared["output_conv"], None)  # final 1x1 conv, no activation
    return out.astype(jnp.float32)


# ---------------------------------------------------------------------------
# Lightweight correctness check of the conv flavours (incl. the fused-subtract path)
# against XLA references (same bf16 operand rounding, f32 accumulation).
# ---------------------------------------------------------------------------
def _bf(a):
    return a.astype(jnp.bfloat16).astype(jnp.float32)


def _prelu_ref(v, alpha):
    return v if alpha is None else jnp.where(v >= 0.0, v, alpha * v)


def _verify_primitives(params, x, scale):
    k, s = get_kernel_stride(scale)
    pad = (k - s) // 2
    t = _cdiv(k, s)
    dn = ("NCHW", "OIHW", "NCHW")
    hp = jax.lax.Precision.HIGHEST

    # 1x1 conv + PReLU
    w, b = params["feat1"]
    wp1 = _pack_conv(w, b, 1, 1)
    mine = conv1x1(x, wp1, ALPHA).astype(jnp.float32)
    ref = jax.lax.conv_general_dilated(_bf(x), _bf(w), (1, 1), [(0, 0), (0, 0)],
                                       dimension_numbers=dn, precision=hp)
    ref = _prelu_ref(ref + b.reshape(1, -1, 1, 1), ALPHA)
    assert bool(jnp.allclose(mine, ref, rtol=0.05, atol=0.05)), "1x1 conv mismatch"

    # ConvTranspose2d + PReLU
    a = ref.astype(jnp.bfloat16)
    w, b = params["up0"]["c1"]
    wpd = _pack_deconv(w, b, k, s)
    cin_pad = wpd["w"].shape[1] // (t * t)
    xf, m = prep_deconv_input(a, k, s, pad, cin_pad)
    mine = run_deconv(xf, None, wpd, m, ALPHA, s).astype(jnp.float32)
    w_eq = jnp.transpose(jnp.flip(_bf(w), (2, 3)), (1, 0, 2, 3))
    ref = jax.lax.conv_general_dilated(_bf(a), w_eq, (1, 1),
                                       [(k - 1 - pad, k - 1 - pad)] * 2,
                                       lhs_dilation=(s, s),
                                       dimension_numbers=dn, precision=hp)
    ref = _prelu_ref(ref + b.reshape(1, -1, 1, 1), ALPHA)
    assert bool(jnp.allclose(mine, ref, rtol=0.05, atol=0.05)), "deconv mismatch"

    # strided Conv2d + PReLU, exercised through the fused residual-subtraction path
    a = ref.astype(jnp.bfloat16)
    a2 = (0.5 * ref).astype(jnp.bfloat16)
    w, b = params["up0"]["c2"]
    wpc = _pack_conv(w, b, k, s)
    cin_pad = wpc["w"].shape[1] // (t * t)
    xf1, m1 = prep_conv_input(a, k, s, pad, cin_pad)
    xf2, m2 = prep_conv_input(a2, k, s, pad, cin_pad)
    assert m1 == m2
    mine = run_conv(xf1, xf2, wpc, m1, ALPHA).astype(jnp.float32)
    diff = a.astype(jnp.float32) - a2.astype(jnp.float32)
    ref = jax.lax.conv_general_dilated(_bf(diff), _bf(w), (s, s), [(pad, pad)] * 2,
                                       dimension_numbers=dn, precision=hp)
    ref = _prelu_ref(ref + b.reshape(1, -1, 1, 1), ALPHA)
    assert bool(jnp.allclose(mine, ref, rtol=0.05, atol=0.05)), "strided conv mismatch"


if __name__ == "__main__":
    key = jax.random.PRNGKey(0)
    kp, kx = jax.random.split(key)

    scale, base_filter, feat, num_stages = 2, 8, 8, 3
    h = w = 8
    params = init_dbpns_params(kp, scale, base_filter, feat, num_stages)
    x = jax.random.normal(kx, (2, base_filter, h, w), jnp.float32)   # NCHW input

    _verify_primitives(params, x, scale)

    prepared = prepare_dbpns_params(params, scale, num_stages)       # packed once
    fwd = jax.jit(functools.partial(dbpns_forward, scale=scale, num_stages=num_stages))
    y = fwd(prepared, x)
    jax.block_until_ready(y)

    assert y.shape == (2, feat, h * scale, w * scale), y.shape
    assert bool(jnp.all(jnp.isfinite(y)))
    print("KERNEL_OK")
</pallas_src>

<mosaic_0001>
module attributes {stable_mosaic.version = 11 : i64} {
  func.func @_gemm_kernel(%arg0: i32, %arg1: memref<16x128xbf16, #tpu.memory_space<vmem>>, %arg2: memref<16x128xbf16, #tpu.memory_space<vmem>>, %arg3: memref<8x16xbf16, #tpu.memory_space<vmem>>, %arg4: memref<8x1xf32, #tpu.memory_space<vmem>>, %arg5: memref<8x128xbf16, #tpu.memory_space<vmem>>) attributes {dimension_semantics = [#tpu.dimension_semantics<parallel>], iteration_bounds = array<i64: 1>, scalar_prefetch = 0 : i64, scratch_operands = 0 : i64, tpu.core_type = #tpu.core_type<tc>, window_params = [{transform_indices = @transform_0, window_bounds = array<i64: 16, 128>}, {transform_indices = @transform_1, window_bounds = array<i64: 16, 128>}, {pipeline_mode = #tpu.pipeline_mode<synchronous>, transform_indices = @transform_2, window_bounds = array<i64: 8, 16>}, {pipeline_mode = #tpu.pipeline_mode<synchronous>, transform_indices = @transform_3, window_bounds = array<i64: 8, 1>}, {transform_indices = @transform_4, window_bounds = array<i64: 8, 128>}]} {
    %c0 = arith.constant 0 : index
    %c0_0 = arith.constant 0 : index
    %0 = vector.load %arg1[%c0, %c0_0] : memref<16x128xbf16, #tpu.memory_space<vmem>>, vector<16x128xbf16>
    %c0_1 = arith.constant 0 : index
    %c0_2 = arith.constant 0 : index
    %1 = vector.load %arg3[%c0_1, %c0_2] : memref<8x16xbf16, #tpu.memory_space<vmem>>, vector<8x16xbf16>
    %cst = arith.constant dense<0.000000e+00> : vector<8x128xf32>
    %2 = tpu.matmul %1, %0, %cst {dimension_numbers = #tpu.dot_dimension_numbers<[1], [0], [0], [1], [0, 0, 1, 1], [], []>} : vector<8x16xbf16>, vector<16x128xbf16>, vector<8x128xf32> -> vector<8x128xf32>
    %c0_3 = arith.constant 0 : index
    %c0_4 = arith.constant 0 : index
    %3 = vector.load %arg4[%c0_3, %c0_4] : memref<8x1xf32, #tpu.memory_space<vmem>>, vector<8x1xf32>
    %4 = vector.broadcast %3 : vector<8x1xf32> to vector<8x128xf32>
    %5 = arith.addf %2, %4 : vector<8x128xf32>
    %cst_5 = arith.constant 0.000000e+00 : f32
    %6 = vector.broadcast %cst_5 : f32 to vector<8x128xf32>
    %7 = arith.cmpf oge, %5, %6 : vector<8x128xf32>
    %cst_6 = arith.constant 2.500000e-01 : f32
    %8 = vector.broadcast %cst_6 : f32 to vector<8x128xf32>
    %9 = arith.mulf %8, %5 : vector<8x128xf32>
    %10 = arith.select %7, %5, %9 : vector<8x128xi1>, vector<8x128xf32>
    %11 = arith.truncf %10 : vector<8x128xf32> to vector<8x128xbf16>
    %c0_7 = arith.constant 0 : index
    %c0_8 = arith.constant 0 : index
    %12 = vector.load %arg5[%c0_7, %c0_8] : memref<8x128xbf16, #tpu.memory_space<vmem>>, vector<8x128xbf16>
    tpu.vector_store %arg5[%c0_7, %c0_8], %11 {strides = array<i32>} : memref<8x128xbf16, #tpu.memory_space<vmem>>, vector<8x128xbf16>,
    return
  }
  func.func @transform_0(%arg0: i32) -> (i32, i32) {
    %c0_i32 = arith.constant 0 : i32
    %c0_i32_0 = arith.constant 0 : i32
    return %c0_i32, %arg0 : i32, i32
  }
  func.func @transform_1(%arg0: i32) -> (i32, i32) {
    %c1_i32 = arith.constant 1 : i32
    %0 = arith.addi %arg0, %c1_i32 : i32
    %c1_i32_0 = arith.constant 1 : i32
    %1 = arith.muli %0, %c1_i32_0 : i32
    %c0_i32 = arith.constant 0 : i32
    %c0_i32_1 = arith.constant 0 : i32
    return %c0_i32, %1 : i32, i32
  }
  func.func @transform_2(%arg0: i32) -> (i32, i32) {
    %c0_i32 = arith.constant 0 : i32
    %c0_i32_0 = arith.constant 0 : i32
    %c0_i32_1 = arith.constant 0 : i32
    return %c0_i32, %c0_i32_0 : i32, i32
  }
  func.func @transform_3(%arg0: i32) -> (i32, i32) {
    %c0_i32 = arith.constant 0 : i32
    %c0_i32_0 = arith.constant 0 : i32
    %c0_i32_1 = arith.constant 0 : i32
    return %c0_i32, %c0_i32_0 : i32, i32
  }
  func.func @transform_4(%arg0: i32) -> (i32, i32) {
    %c0_i32 = arith.constant 0 : i32
    %c0_i32_0 = arith.constant 0 : i32
    return %c0_i32, %arg0 : i32, i32
  }
}

</mosaic_0001>

<bundles_post_ra>
// kernel: tpu_custom_call.1
= control target key start
LH: loop header
LB: loop body
LE: loop exit
PB: predicated region body
PF: predicated region fallthrough
CT: control target
= control target key end

     0   :  { %9 = vsyncpa [#allocation3], 0  ;;  %s250_s0 = inlined_call_operand.hbm [shape: bf16[16,256], index: 0, kind: input, shape index: {}]   ;;  %s251_s1 = inlined_call_operand.hbm [shape: bf16[16,256], index: 1, kind: input, shape index: {}]   ;;  %s252_s2 = inlined_call_operand.vmem [shape: bf16[8,16], index: 2, kind: input, shape index: {}]   ;;  %s253_s3 = inlined_call_operand.vmem [shape: f32[8,1], index: 3, kind: input, shape index: {}]   ;;  %s254_s4 = inlined_call_operand.hbm [shape: bf16[8,128], index: 4, kind: output, shape index: {}]  }
   0x1   :  { %10 = vsyncpa [#allocation6], 0 }
   0x2   :  { %11 = vsyncpa [#allocation4], 0  ;;  %s16_s17 = sshll.u32 %s250_s0, 4  ;;  %s203_s18 = smov [#allocation2]   ;;  %s17_s17 = int_to_ptr.hbm [resolvable:$true] %s16_s17 }
   0x3   :  { %s18_s19 = sshll.u32 %s203_s18, 4  ;;  %s204_s20 = smov 128   ;;  %s19_s19 = int_to_ptr.vmem [resolvable:$true] %s18_s19 }
   0x4   :  { %s205_s21 = smov 64   ;;  %s206_s22 = smov 4  }
   0x5   :  { %24 = dma.hbm_to_vmem [thread:$0]  %s17_s17, 128, %s19_s19, [#allocation3], %s204_s20, %s205_s21, %s206_s22  }
   0x6   :  { %s110_s25 = scalar_lea.hbm %s251_s1, 4  ;;  %s207_s27 = smov [#allocation5]  }
   0x7   :  { %s32_s26 = sshll.u32 %s110_s25, 4  ;;  %s34_s28 = sshll.u32 %s207_s27, 4  ;;  %s33_s26 = int_to_ptr.hbm [resolvable:$true] %s32_s26  ;;  %s35_s28 = int_to_ptr.vmem [resolvable:$true] %s34_s28 }
   0x8   :  { %40 = dma.hbm_to_vmem [thread:$0]  %s33_s26, 128, %s35_s28, [#allocation6], %s204_s20, %s205_s21, %s206_s22  }
   0x9   :  { %197 = dma.done.wait [#allocation3], 128  }
   0xa   :  { %198 = vsyncadd [#allocation3], 4294967168 }
   0xb   :  { %199 = dma.done.wait [#allocation6], 128  }
   0xc   :  { %200 = vsyncadd [#allocation6], 4294967168  ;;  %v208_v0 = vmov 0   ;;  %v116_v1 = vld [vmem:[#allocation2] sm:$0xff]  ;;  %vm70_vm0 = vcmask 130048   ;;  %s209_s5 = smov [#allocation7]  }
   0xd   :  { %124 = vset.pattern.permute.xlu0 %v208_v0  ;;  %v58_v2 = vld [vmem:[%s253_s3] sm:$0xff]  ;;  %81 = vmatpush.bf16.msra.mxu0 %v116_v1  ;;  %s97_s6 = sshll.u32 %s209_s5, 4  ;;  %s99_s9 = sshll.u32 %s254_s4, 4  ;;  %s98_s6 = int_to_ptr.vmem [resolvable:$true] %s97_s6  ;;  %s100_s9 = int_to_ptr.hbm [resolvable:$true] %s99_s9 }
   0xe   :  { %61 = vperm.xlu0 %124, %v58_v2   ;;  %v57_v3 = vld [vmem:[%s252_s2] sm:$0xf] }
  0x10   :  { %115 = vmatmul.msk.bf16.vlgmr.msra.gmra.mxu0 %vm70_vm0, %v57_v3 }
  0x80   :  { %v62_v4 = vpop.permute.xlu0 %61 }
  0x8d   :  { %v83_v5 = vpop.f32.mrf.mxu0 }
  0x8e   :  { %v84_v6 = vadd.f32 %v83_v5, %v62_v4 }
  0x90   :  { %vm87_vm1 = vcmp.ge.f32.partialorder %v84_v6, 0.0  ;;  %v88_v7 = vmul.f32 0.25, %v84_v6 }
  0x92   :  { %v89_v8 = vsel %vm87_vm1, %v84_v6, %v88_v7 }
  0x93   :  { %v90_v9 = vpack.c.bf16 %v89_v8, %v89_v8 }
  0x95   :  { %91 = vst [vmem:[#allocation7] sm:$0xf] %v90_v9  ;;  %v85_v10 = vpop.f32.mrf.mxu0 }
  0x96   :  { %102 = dma.vmem_to_hbm [thread:$0]  %s98_s6, 64, %s100_s9, [#allocation4]  }
  0x97   :  { %201 = dma.done.wait [#allocation4], 64  }
  0x98   :  { %202 = vsyncadd [#allocation4], 4294967232 }
  0x99   :  { %107 = vsyncpa [#allocation3], 1 }
  0x9a   :  { %108 = vsyncpa [#allocation6], 1 }
  0x9b   :  { %109 = vsyncpa [#allocation4], 1 }

</bundles_post_ra>
